<compile_context>
chip_gen: v7x
topology: tpu7x:2x2x1
jax: 0.10.0
libtpu: 0.0.40
codegen_flags: <defaults>
</compile_context>

<pallas_src>
import jax
import jax.numpy as jnp
from jax.experimental import pallas as pl
from jax.experimental.pallas import tpu as pltpu


# ----------------------------------------------------------------------------
# Pallas kernel: one batch sample per grid step (grid axis marked "parallel").
# ----------------------------------------------------------------------------
def spatial_attention_kernel(x_ref, w_ref, b_ref, o_ref, pad_ref):
    """
    x_ref:   (C, D, HW)       native dtype  one sample (N squeezed by the grid)
    w_ref:   (K, 2*HW, HW)    bfloat16      factored conv matrices (VMEM-resident)
    b_ref:   (1,)             float32       conv bias (SMEM scalar)
    o_ref:   (D, HW)          x.dtype       sigmoid(conv(cat([maxpool, avgpool])))
    pad_ref: (D + 2*P, 2*HW)  float32       D-zero-padded [max | sum] staging buffer
    """
    C, D, HW = x_ref.shape
    KD = w_ref.shape[0]
    P = KD // 2

    # ---- fused streaming channel reduction: single pass over C -------------
    x0 = x_ref[0]

    def body(c, carry):
        m, s = carry
        xc = x_ref[c]                                     # (D, HW) native dtype
        return jnp.maximum(m, xc), s + xc.astype(jnp.float32)

    ch_max, ch_sum = jax.lax.fori_loop(
        1, C, body, (x0, x0.astype(jnp.float32)), unroll=True)

    # ---- stage zero-padded (over D) pooled rows: [max | sum] on lane axis --
    pad_ref[...] = jnp.zeros_like(pad_ref)
    pad_ref[P:P + D, 0:HW] = ch_max.astype(jnp.float32)
    pad_ref[P:P + D, HW:2 * HW] = ch_sum                  # 1/C is folded into the weights

    # ---- factored conv: K small MXU matmuls over D-shifted slabs -----------
    acc = jnp.zeros((D, HW), jnp.float32)
    for kd in range(KD):                                  # static unroll, KD == 7
        slab = pad_ref[kd:kd + D, :].astype(jnp.bfloat16)          # (D, 2*HW)
        acc += jnp.dot(slab, w_ref[kd], preferred_element_type=jnp.float32)

    o_ref[...] = jax.nn.sigmoid(acc + b_ref[0]).astype(o_ref.dtype)


# ----------------------------------------------------------------------------
# One-time parameter setup (NOT in the per-call forward path).
# ----------------------------------------------------------------------------
def build_spatial_attention_weights(conv_w, conv_b, C, H, W):
    """Turn the Conv3d(2->1, k, padding=k//2) weights into K factored dense matrices,
    one per D-offset.  w_factored[kd] is (2*HW, HW) with
      rows [0,    HW) : max-pool channel (conv in-channel 0)
      rows [HW, 2*HW) : avg-pool channel (conv in-channel 1), 1/C mean divisor folded in
    so the kernel computes out[d] = sum_kd [max | sum]_padded[d + kd] @ w_factored[kd].
    """
    K = conv_w.shape[-1]
    P = K // 2
    HW = H * W
    wk = jnp.asarray(conv_w, jnp.float32)[0]              # (2, K, K, K)

    def toeplitz_idx(L):
        k = jnp.arange(L)[:, None] - jnp.arange(L)[None, :] + P   # (L_in, L_out)
        return jnp.clip(k, 0, K - 1), (k >= 0) & (k < K)

    kh, vh = toeplitz_idx(H)
    kw, vw = toeplitz_idx(W)
    idx_h = kh[:, None, :, None]                          # (H, 1, H, 1)
    idx_w = kw[None, :, None, :]                          # (1, W, 1, W)
    T = wk[:, :, idx_h, idx_w]                            # (2, K, H, W, H, W)
    valid = (vh[:, None, :, None] & vw[None, :, None, :]).astype(jnp.float32)
    T = T * valid[None, None]
    T = T.at[1].multiply(1.0 / C)                         # fold the mean divisor
    # (2, K, HW, HW) -> (K, 2, HW, HW) -> (K, 2*HW, HW); row order matches [max | sum].
    T = T.reshape(2, K, HW, HW).transpose(1, 0, 2, 3).reshape(K, 2 * HW, HW)
    return T.astype(jnp.bfloat16), jnp.asarray(conv_b, jnp.float32).reshape(1)


# ----------------------------------------------------------------------------
# Jitted forward wrapper (reshape + pallas_call + reshape only).
# ----------------------------------------------------------------------------
@jax.jit
def spatial_attention_forward(x, w_factored, bias):
    N, C, D, H, W = x.shape
    HW = H * W
    KD = w_factored.shape[0]
    P = KD // 2

    x4 = x.reshape(N, C, D, HW)                           # metadata-only reshape

    out = pl.pallas_call(
        spatial_attention_kernel,
        out_shape=jax.ShapeDtypeStruct((N, D, HW), x.dtype),
        grid=(N,),
        in_specs=[
            pl.BlockSpec((None, C, D, HW), lambda n: (n, 0, 0, 0)),   # x: one sample / step
            pl.BlockSpec((KD, 2 * HW, HW), lambda n: (0, 0, 0)),      # weights: resident
            pl.BlockSpec(memory_space=pltpu.MemorySpace.SMEM),        # bias scalar
        ],
        out_specs=pl.BlockSpec((None, D, HW), lambda n: (n, 0, 0)),
        scratch_shapes=[pltpu.VMEM((D + 2 * P, 2 * HW), jnp.float32)],
        compiler_params=pltpu.CompilerParams(
            dimension_semantics=("parallel",)),
    )(x4, w_factored, bias)

    return out.reshape(N, 1, D, H, W)


# ----------------------------------------------------------------------------
# Pure-JAX reference (mirrors the PyTorch module, dimension=3)
# ----------------------------------------------------------------------------
def spatial_attention_ref(x, conv_w, conv_b):
    K = conv_w.shape[-1]
    P = K // 2
    maxp = jnp.max(x, axis=1, keepdims=True)
    avgp = jnp.mean(x, axis=1, keepdims=True)
    blk = jnp.concatenate([maxp, avgp], axis=1).astype(jnp.float32)
    conv = jax.lax.conv_general_dilated(
        blk, conv_w.astype(jnp.float32),
        window_strides=(1, 1, 1), padding=[(P, P)] * 3,
        dimension_numbers=("NCDHW", "OIDHW", "NCDHW"),
        precision=jax.lax.Precision.HIGHEST,
    ) + conv_b.reshape(1, 1, 1, 1, 1).astype(jnp.float32)
    return jax.nn.sigmoid(conv)


# ----------------------------------------------------------------------------
if __name__ == "__main__":
    N, C, D, H, W = 2, 16, 8, 16, 8    # HW = 128 (lane-dense), S = D*H*W = 1024
    K = 7

    key = jax.random.PRNGKey(0)
    k1, k2, k3 = jax.random.split(key, 3)
    x = jax.random.normal(k1, (N, C, D, H, W), jnp.float32)
    conv_w = jax.random.normal(k2, (1, 2, K, K, K), jnp.float32) * 0.05  # Conv3d(2->1,k=7) weight
    conv_b = jax.random.normal(k3, (1,), jnp.float32) * 0.05             # Conv3d bias

    # One-time parameter setup (outside the jitted forward path).
    w_factored, bias = build_spatial_attention_weights(conv_w, conv_b, C, H, W)

    out = spatial_attention_forward(x, w_factored, bias)
    jax.block_until_ready(out)

    ref = spatial_attention_ref(x, conv_w, conv_b)
    assert out.shape == (N, 1, D, H, W)
    max_err = float(jnp.max(jnp.abs(out.astype(jnp.float32) - ref)))
    assert max_err < 2e-2, f"max abs error too large: {max_err}"

    print("KERNEL_OK")
</pallas_src>

<mosaic_0001>
module attributes {stable_mosaic.version = 11 : i64} {
  func.func @spatial_attention_kernel(%arg0: i32, %arg1: memref<1x16x8x128xf32, #tpu.memory_space<vmem>>, %arg2: memref<7x256x128xbf16, #tpu.memory_space<vmem>>, %arg3: memref<1xf32, #tpu.memory_space<smem>>, %arg4: memref<1x8x128xf32, #tpu.memory_space<vmem>>, %arg5: memref<14x256xf32, #tpu.memory_space<vmem>>) attributes {dimension_semantics = [#tpu.dimension_semantics<parallel>], iteration_bounds = array<i64: 2>, scalar_prefetch = 0 : i64, scratch_operands = 1 : i64, tpu.core_type = #tpu.core_type<tc>, window_params = [{transform_indices = @transform_0, window_bounds = array<i64: 1, 16, 8, 128>}, {pipeline_mode = #tpu.pipeline_mode<synchronous>, transform_indices = @transform_1, window_bounds = array<i64: 7, 256, 128>}, {transform_indices = @transform_2, window_bounds = array<i64: 1>}, {transform_indices = @transform_3, window_bounds = array<i64: 1, 8, 128>}]} {
    %c0 = arith.constant 0 : index
    %c0_0 = arith.constant 0 : index
    %c0_1 = arith.constant 0 : index
    %c0_2 = arith.constant 0 : index
    %0 = vector.load %arg1[%c0, %c0_0, %c0_1, %c0_2] : memref<1x16x8x128xf32, #tpu.memory_space<vmem>>, vector<1x1x8x128xf32>
    %1 = vector.shape_cast %0 : vector<1x1x8x128xf32> to vector<8x128xf32>
    %c1_i32 = arith.constant 1 : i32
    %c0_3 = arith.constant 0 : index
    %2 = arith.index_cast %c1_i32 : i32 to index
    %c0_4 = arith.constant 0 : index
    %c0_5 = arith.constant 0 : index
    %3 = vector.load %arg1[%c0_3, %2, %c0_4, %c0_5] : memref<1x16x8x128xf32, #tpu.memory_space<vmem>>, vector<1x1x8x128xf32>
    %4 = vector.shape_cast %3 : vector<1x1x8x128xf32> to vector<8x128xf32>
    %5 = arith.maximumf %1, %4 : vector<8x128xf32>
    %6 = arith.addf %1, %4 : vector<8x128xf32>
    %c2_i32 = arith.constant 2 : i32
    %c0_6 = arith.constant 0 : index
    %7 = arith.index_cast %c2_i32 : i32 to index
    %c0_7 = arith.constant 0 : index
    %c0_8 = arith.constant 0 : index
    %8 = vector.load %arg1[%c0_6, %7, %c0_7, %c0_8] : memref<1x16x8x128xf32, #tpu.memory_space<vmem>>, vector<1x1x8x128xf32>
    %9 = vector.shape_cast %8 : vector<1x1x8x128xf32> to vector<8x128xf32>
    %10 = arith.maximumf %5, %9 : vector<8x128xf32>
    %11 = arith.addf %6, %9 : vector<8x128xf32>
    %c3_i32 = arith.constant 3 : i32
    %c0_9 = arith.constant 0 : index
    %12 = arith.index_cast %c3_i32 : i32 to index
    %c0_10 = arith.constant 0 : index
    %c0_11 = arith.constant 0 : index
    %13 = vector.load %arg1[%c0_9, %12, %c0_10, %c0_11] : memref<1x16x8x128xf32, #tpu.memory_space<vmem>>, vector<1x1x8x128xf32>
    %14 = vector.shape_cast %13 : vector<1x1x8x128xf32> to vector<8x128xf32>
    %15 = arith.maximumf %10, %14 : vector<8x128xf32>
    %16 = arith.addf %11, %14 : vector<8x128xf32>
    %c4_i32 = arith.constant 4 : i32
    %c0_12 = arith.constant 0 : index
    %17 = arith.index_cast %c4_i32 : i32 to index
    %c0_13 = arith.constant 0 : index
    %c0_14 = arith.constant 0 : index
    %18 = vector.load %arg1[%c0_12, %17, %c0_13, %c0_14] : memref<1x16x8x128xf32, #tpu.memory_space<vmem>>, vector<1x1x8x128xf32>
    %19 = vector.shape_cast %18 : vector<1x1x8x128xf32> to vector<8x128xf32>
    %20 = arith.maximumf %15, %19 : vector<8x128xf32>
    %21 = arith.addf %16, %19 : vector<8x128xf32>
    %c5_i32 = arith.constant 5 : i32
    %c0_15 = arith.constant 0 : index
    %22 = arith.index_cast %c5_i32 : i32 to index
    %c0_16 = arith.constant 0 : index
    %c0_17 = arith.constant 0 : index
    %23 = vector.load %arg1[%c0_15, %22, %c0_16, %c0_17] : memref<1x16x8x128xf32, #tpu.memory_space<vmem>>, vector<1x1x8x128xf32>
    %24 = vector.shape_cast %23 : vector<1x1x8x128xf32> to vector<8x128xf32>
    %25 = arith.maximumf %20, %24 : vector<8x128xf32>
    %26 = arith.addf %21, %24 : vector<8x128xf32>
    %c6_i32 = arith.constant 6 : i32
    %c0_18 = arith.constant 0 : index
    %27 = arith.index_cast %c6_i32 : i32 to index
    %c0_19 = arith.constant 0 : index
    %c0_20 = arith.constant 0 : index
    %28 = vector.load %arg1[%c0_18, %27, %c0_19, %c0_20] : memref<1x16x8x128xf32, #tpu.memory_space<vmem>>, vector<1x1x8x128xf32>
    %29 = vector.shape_cast %28 : vector<1x1x8x128xf32> to vector<8x128xf32>
    %30 = arith.maximumf %25, %29 : vector<8x128xf32>
    %31 = arith.addf %26, %29 : vector<8x128xf32>
    %c7_i32 = arith.constant 7 : i32
    %c0_21 = arith.constant 0 : index
    %32 = arith.index_cast %c7_i32 : i32 to index
    %c0_22 = arith.constant 0 : index
    %c0_23 = arith.constant 0 : index
    %33 = vector.load %arg1[%c0_21, %32, %c0_22, %c0_23] : memref<1x16x8x128xf32, #tpu.memory_space<vmem>>, vector<1x1x8x128xf32>
    %34 = vector.shape_cast %33 : vector<1x1x8x128xf32> to vector<8x128xf32>
    %35 = arith.maximumf %30, %34 : vector<8x128xf32>
    %36 = arith.addf %31, %34 : vector<8x128xf32>
    %c8_i32 = arith.constant 8 : i32
    %c0_24 = arith.constant 0 : index
    %37 = arith.index_cast %c8_i32 : i32 to index
    %c0_25 = arith.constant 0 : index
    %c0_26 = arith.constant 0 : index
    %38 = vector.load %arg1[%c0_24, %37, %c0_25, %c0_26] : memref<1x16x8x128xf32, #tpu.memory_space<vmem>>, vector<1x1x8x128xf32>
    %39 = vector.shape_cast %38 : vector<1x1x8x128xf32> to vector<8x128xf32>
    %40 = arith.maximumf %35, %39 : vector<8x128xf32>
    %41 = arith.addf %36, %39 : vector<8x128xf32>
    %c9_i32 = arith.constant 9 : i32
    %c0_27 = arith.constant 0 : index
    %42 = arith.index_cast %c9_i32 : i32 to index
    %c0_28 = arith.constant 0 : index
    %c0_29 = arith.constant 0 : index
    %43 = vector.load %arg1[%c0_27, %42, %c0_28, %c0_29] : memref<1x16x8x128xf32, #tpu.memory_space<vmem>>, vector<1x1x8x128xf32>
    %44 = vector.shape_cast %43 : vector<1x1x8x128xf32> to vector<8x128xf32>
    %45 = arith.maximumf %40, %44 : vector<8x128xf32>
    %46 = arith.addf %41, %44 : vector<8x128xf32>
    %c10_i32 = arith.constant 10 : i32
    %c0_30 = arith.constant 0 : index
    %47 = arith.index_cast %c10_i32 : i32 to index
    %c0_31 = arith.constant 0 : index
    %c0_32 = arith.constant 0 : index
    %48 = vector.load %arg1[%c0_30, %47, %c0_31, %c0_32] : memref<1x16x8x128xf32, #tpu.memory_space<vmem>>, vector<1x1x8x128xf32>
    %49 = vector.shape_cast %48 : vector<1x1x8x128xf32> to vector<8x128xf32>
    %50 = arith.maximumf %45, %49 : vector<8x128xf32>
    %51 = arith.addf %46, %49 : vector<8x128xf32>
    %c11_i32 = arith.constant 11 : i32
    %c0_33 = arith.constant 0 : index
    %52 = arith.index_cast %c11_i32 : i32 to index
    %c0_34 = arith.constant 0 : index
    %c0_35 = arith.constant 0 : index
    %53 = vector.load %arg1[%c0_33, %52, %c0_34, %c0_35] : memref<1x16x8x128xf32, #tpu.memory_space<vmem>>, vector<1x1x8x128xf32>
    %54 = vector.shape_cast %53 : vector<1x1x8x128xf32> to vector<8x128xf32>
    %55 = arith.maximumf %50, %54 : vector<8x128xf32>
    %56 = arith.addf %51, %54 : vector<8x128xf32>
    %c12_i32 = arith.constant 12 : i32
    %c0_36 = arith.constant 0 : index
    %57 = arith.index_cast %c12_i32 : i32 to index
    %c0_37 = arith.constant 0 : index
    %c0_38 = arith.constant 0 : index
    %58 = vector.load %arg1[%c0_36, %57, %c0_37, %c0_38] : memref<1x16x8x128xf32, #tpu.memory_space<vmem>>, vector<1x1x8x128xf32>
    %59 = vector.shape_cast %58 : vector<1x1x8x128xf32> to vector<8x128xf32>
    %60 = arith.maximumf %55, %59 : vector<8x128xf32>
    %61 = arith.addf %56, %59 : vector<8x128xf32>
    %c13_i32 = arith.constant 13 : i32
    %c0_39 = arith.constant 0 : index
    %62 = arith.index_cast %c13_i32 : i32 to index
    %c0_40 = arith.constant 0 : index
    %c0_41 = arith.constant 0 : index
    %63 = vector.load %arg1[%c0_39, %62, %c0_40, %c0_41] : memref<1x16x8x128xf32, #tpu.memory_space<vmem>>, vector<1x1x8x128xf32>
    %64 = vector.shape_cast %63 : vector<1x1x8x128xf32> to vector<8x128xf32>
    %65 = arith.maximumf %60, %64 : vector<8x128xf32>
    %66 = arith.addf %61, %64 : vector<8x128xf32>
    %c14_i32 = arith.constant 14 : i32
    %c0_42 = arith.constant 0 : index
    %67 = arith.index_cast %c14_i32 : i32 to index
    %c0_43 = arith.constant 0 : index
    %c0_44 = arith.constant 0 : index
    %68 = vector.load %arg1[%c0_42, %67, %c0_43, %c0_44] : memref<1x16x8x128xf32, #tpu.memory_space<vmem>>, vector<1x1x8x128xf32>
    %69 = vector.shape_cast %68 : vector<1x1x8x128xf32> to vector<8x128xf32>
    %70 = arith.maximumf %65, %69 : vector<8x128xf32>
    %71 = arith.addf %66, %69 : vector<8x128xf32>
    %c15_i32 = arith.constant 15 : i32
    %c0_45 = arith.constant 0 : index
    %72 = arith.index_cast %c15_i32 : i32 to index
    %c0_46 = arith.constant 0 : index
    %c0_47 = arith.constant 0 : index
    %73 = vector.load %arg1[%c0_45, %72, %c0_46, %c0_47] : memref<1x16x8x128xf32, #tpu.memory_space<vmem>>, vector<1x1x8x128xf32>
    %74 = vector.shape_cast %73 : vector<1x1x8x128xf32> to vector<8x128xf32>
    %75 = arith.maximumf %70, %74 : vector<8x128xf32>
    %76 = arith.addf %71, %74 : vector<8x128xf32>
    %c15_i32_48 = arith.constant 15 : i32
    %cst = arith.constant 0.000000e+00 : f32
    %77 = vector.broadcast %cst : f32 to vector<14x256xf32>
    %c0_49 = arith.constant 0 : index
    %c0_50 = arith.constant 0 : index
    %78 = vector.load %arg5[%c0_49, %c0_50] : memref<14x256xf32, #tpu.memory_space<vmem>>, vector<14x256xf32>
    tpu.vector_store %arg5[%c0_49, %c0_50], %77 {strides = array<i32>} : memref<14x256xf32, #tpu.memory_space<vmem>>, vector<14x256xf32>,
    %c3 = arith.constant 3 : index
    %c0_51 = arith.constant 0 : index
    %79 = vector.load %arg5[%c3, %c0_51] : memref<14x256xf32, #tpu.memory_space<vmem>>, vector<8x128xf32>
    tpu.vector_store %arg5[%c3, %c0_51], %75 {strides = array<i32>} : memref<14x256xf32, #tpu.memory_space<vmem>>, vector<8x128xf32>,
    %c3_52 = arith.constant 3 : index
    %c128 = arith.constant 128 : index
    %80 = vector.load %arg5[%c3_52, %c128] : memref<14x256xf32, #tpu.memory_space<vmem>>, vector<8x128xf32>
    tpu.vector_store %arg5[%c3_52, %c128], %76 {strides = array<i32>} : memref<14x256xf32, #tpu.memory_space<vmem>>, vector<8x128xf32>,
    %cst_53 = arith.constant 0.000000e+00 : f32
    %81 = vector.broadcast %cst_53 : f32 to vector<8x128xf32>
    %c0_54 = arith.constant 0 : index
    %c0_55 = arith.constant 0 : index
    %82 = vector.load %arg5[%c0_54, %c0_55] : memref<14x256xf32, #tpu.memory_space<vmem>>, vector<8x256xf32>
    %83 = arith.truncf %82 : vector<8x256xf32> to vector<8x256xbf16>
    %c0_56 = arith.constant 0 : index
    %c0_57 = arith.constant 0 : index
    %c0_58 = arith.constant 0 : index
    %84 = vector.load %arg2[%c0_56, %c0_57, %c0_58] : memref<7x256x128xbf16, #tpu.memory_space<vmem>>, vector<1x256x128xbf16>
    %85 = vector.shape_cast %84 : vector<1x256x128xbf16> to vector<256x128xbf16>
    %cst_59 = arith.constant dense<0.000000e+00> : vector<8x128xf32>
    %86 = tpu.matmul %83, %85, %cst_59 {dimension_numbers = #tpu.dot_dimension_numbers<[1], [0], [0], [1], [0, 0, 1, 1], [], []>} : vector<8x256xbf16>, vector<256x128xbf16>, vector<8x128xf32> -> vector<8x128xf32>
    %87 = arith.addf %81, %86 : vector<8x128xf32>
    %c1 = arith.constant 1 : index
    %c0_60 = arith.constant 0 : index
    %88 = vector.load %arg5[%c1, %c0_60] : memref<14x256xf32, #tpu.memory_space<vmem>>, vector<8x256xf32>
    %89 = arith.truncf %88 : vector<8x256xf32> to vector<8x256xbf16>
    %c1_61 = arith.constant 1 : index
    %c0_62 = arith.constant 0 : index
    %c0_63 = arith.constant 0 : index
    %90 = vector.load %arg2[%c1_61, %c0_62, %c0_63] : memref<7x256x128xbf16, #tpu.memory_space<vmem>>, vector<1x256x128xbf16>
    %91 = vector.shape_cast %90 : vector<1x256x128xbf16> to vector<256x128xbf16>
    %cst_64 = arith.constant dense<0.000000e+00> : vector<8x128xf32>
    %92 = tpu.matmul %89, %91, %cst_64 {dimension_numbers = #tpu.dot_dimension_numbers<[1], [0], [0], [1], [0, 0, 1, 1], [], []>} : vector<8x256xbf16>, vector<256x128xbf16>, vector<8x128xf32> -> vector<8x128xf32>
    %93 = arith.addf %87, %92 : vector<8x128xf32>
    %c2 = arith.constant 2 : index
    %c0_65 = arith.constant 0 : index
    %94 = vector.load %arg5[%c2, %c0_65] : memref<14x256xf32, #tpu.memory_space<vmem>>, vector<8x256xf32>
    %95 = arith.truncf %94 : vector<8x256xf32> to vector<8x256xbf16>
    %c2_66 = arith.constant 2 : index
    %c0_67 = arith.constant 0 : index
    %c0_68 = arith.constant 0 : index
    %96 = vector.load %arg2[%c2_66, %c0_67, %c0_68] : memref<7x256x128xbf16, #tpu.memory_space<vmem>>, vector<1x256x128xbf16>
    %97 = vector.shape_cast %96 : vector<1x256x128xbf16> to vector<256x128xbf16>
    %cst_69 = arith.constant dense<0.000000e+00> : vector<8x128xf32>
    %98 = tpu.matmul %95, %97, %cst_69 {dimension_numbers = #tpu.dot_dimension_numbers<[1], [0], [0], [1], [0, 0, 1, 1], [], []>} : vector<8x256xbf16>, vector<256x128xbf16>, vector<8x128xf32> -> vector<8x128xf32>
    %99 = arith.addf %93, %98 : vector<8x128xf32>
    %c3_70 = arith.constant 3 : index
    %c0_71 = arith.constant 0 : index
    %100 = vector.load %arg5[%c3_70, %c0_71] : memref<14x256xf32, #tpu.memory_space<vmem>>, vector<8x256xf32>
    %101 = arith.truncf %100 : vector<8x256xf32> to vector<8x256xbf16>
    %c3_72 = arith.constant 3 : index
    %c0_73 = arith.constant 0 : index
    %c0_74 = arith.constant 0 : index
    %102 = vector.load %arg2[%c3_72, %c0_73, %c0_74] : memref<7x256x128xbf16, #tpu.memory_space<vmem>>, vector<1x256x128xbf16>
    %103 = vector.shape_cast %102 : vector<1x256x128xbf16> to vector<256x128xbf16>
    %cst_75 = arith.constant dense<0.000000e+00> : vector<8x128xf32>
    %104 = tpu.matmul %101, %103, %cst_75 {dimension_numbers = #tpu.dot_dimension_numbers<[1], [0], [0], [1], [0, 0, 1, 1], [], []>} : vector<8x256xbf16>, vector<256x128xbf16>, vector<8x128xf32> -> vector<8x128xf32>
    %105 = arith.addf %99, %104 : vector<8x128xf32>
    %c4 = arith.constant 4 : index
    %c0_76 = arith.constant 0 : index
    %106 = vector.load %arg5[%c4, %c0_76] : memref<14x256xf32, #tpu.memory_space<vmem>>, vector<8x256xf32>
    %107 = arith.truncf %106 : vector<8x256xf32> to vector<8x256xbf16>
    %c4_77 = arith.constant 4 : index
    %c0_78 = arith.constant 0 : index
    %c0_79 = arith.constant 0 : index
    %108 = vector.load %arg2[%c4_77, %c0_78, %c0_79] : memref<7x256x128xbf16, #tpu.memory_space<vmem>>, vector<1x256x128xbf16>
    %109 = vector.shape_cast %108 : vector<1x256x128xbf16> to vector<256x128xbf16>
    %cst_80 = arith.constant dense<0.000000e+00> : vector<8x128xf32>
    %110 = tpu.matmul %107, %109, %cst_80 {dimension_numbers = #tpu.dot_dimension_numbers<[1], [0], [0], [1], [0, 0, 1, 1], [], []>} : vector<8x256xbf16>, vector<256x128xbf16>, vector<8x128xf32> -> vector<8x128xf32>
    %111 = arith.addf %105, %110 : vector<8x128xf32>
    %c5 = arith.constant 5 : index
    %c0_81 = arith.constant 0 : index
    %112 = vector.load %arg5[%c5, %c0_81] : memref<14x256xf32, #tpu.memory_space<vmem>>, vector<8x256xf32>
    %113 = arith.truncf %112 : vector<8x256xf32> to vector<8x256xbf16>
    %c5_82 = arith.constant 5 : index
    %c0_83 = arith.constant 0 : index
    %c0_84 = arith.constant 0 : index
    %114 = vector.load %arg2[%c5_82, %c0_83, %c0_84] : memref<7x256x128xbf16, #tpu.memory_space<vmem>>, vector<1x256x128xbf16>
    %115 = vector.shape_cast %114 : vector<1x256x128xbf16> to vector<256x128xbf16>
    %cst_85 = arith.constant dense<0.000000e+00> : vector<8x128xf32>
    %116 = tpu.matmul %113, %115, %cst_85 {dimension_numbers = #tpu.dot_dimension_numbers<[1], [0], [0], [1], [0, 0, 1, 1], [], []>} : vector<8x256xbf16>, vector<256x128xbf16>, vector<8x128xf32> -> vector<8x128xf32>
    %117 = arith.addf %111, %116 : vector<8x128xf32>
    %c6 = arith.constant 6 : index
    %c0_86 = arith.constant 0 : index
    %118 = vector.load %arg5[%c6, %c0_86] : memref<14x256xf32, #tpu.memory_space<vmem>>, vector<8x256xf32>
    %119 = arith.truncf %118 : vector<8x256xf32> to vector<8x256xbf16>
    %c6_87 = arith.constant 6 : index
    %c0_88 = arith.constant 0 : index
    %c0_89 = arith.constant 0 : index
    %120 = vector.load %arg2[%c6_87, %c0_88, %c0_89] : memref<7x256x128xbf16, #tpu.memory_space<vmem>>, vector<1x256x128xbf16>
    %121 = vector.shape_cast %120 : vector<1x256x128xbf16> to vector<256x128xbf16>
    %cst_90 = arith.constant dense<0.000000e+00> : vector<8x128xf32>
    %122 = tpu.matmul %119, %121, %cst_90 {dimension_numbers = #tpu.dot_dimension_numbers<[1], [0], [0], [1], [0, 0, 1, 1], [], []>} : vector<8x256xbf16>, vector<256x128xbf16>, vector<8x128xf32> -> vector<8x128xf32>
    %123 = arith.addf %117, %122 : vector<8x128xf32>
    %c0_91 = arith.constant 0 : index
    %124 = memref.load %arg3[%c0_91] : memref<1xf32, #tpu.memory_space<smem>>
    %125 = vector.broadcast %124 : f32 to vector<8x128xf32>
    %126 = arith.addf %123, %125 : vector<8x128xf32>
    %127 = arith.negf %126 : vector<8x128xf32>
    %128 = math.exp %127 : vector<8x128xf32>
    %cst_92 = arith.constant 1.000000e+00 : f32
    %129 = vector.broadcast %cst_92 : f32 to vector<8x128xf32>
    %130 = arith.addf %129, %128 : vector<8x128xf32>
    %131 = arith.divf %129, %130 : vector<8x128xf32>
    %c0_93 = arith.constant 0 : index
    %c0_94 = arith.constant 0 : index
    %c0_95 = arith.constant 0 : index
    %132 = vector.load %arg4[%c0_93, %c0_94, %c0_95] : memref<1x8x128xf32, #tpu.memory_space<vmem>>, vector<1x8x128xf32>
    %133 = vector.shape_cast %132 : vector<1x8x128xf32> to vector<8x128xf32>
    %134 = vector.shape_cast %131 : vector<8x128xf32> to vector<1x8x128xf32>
    tpu.vector_store %arg4[%c0_93, %c0_94, %c0_95], %134 {strides = array<i32>} : memref<1x8x128xf32, #tpu.memory_space<vmem>>, vector<1x8x128xf32>,
    return
  }
  func.func @transform_0(%arg0: i32) -> (i32, i32, i32, i32) {
    %c0_i32 = arith.constant 0 : i32
    %c0_i32_0 = arith.constant 0 : i32
    %c0_i32_1 = arith.constant 0 : i32
    %c0_i32_2 = arith.constant 0 : i32
    return %arg0, %c0_i32, %c0_i32_0, %c0_i32_1 : i32, i32, i32, i32
  }
  func.func @transform_1(%arg0: i32) -> (i32, i32, i32) {
    %c0_i32 = arith.constant 0 : i32
    %c0_i32_0 = arith.constant 0 : i32
    %c0_i32_1 = arith.constant 0 : i32
    %c0_i32_2 = arith.constant 0 : i32
    return %c0_i32, %c0_i32_0, %c0_i32_1 : i32, i32, i32
  }
  func.func @transform_2(%arg0: i32) -> i32 {
    %c0_i32 = arith.constant 0 : i32
    %c0_i32_0 = arith.constant 0 : i32
    return %c0_i32 : i32
  }
  func.func @transform_3(%arg0: i32) -> (i32, i32, i32) {
    %c0_i32 = arith.constant 0 : i32
    %c0_i32_0 = arith.constant 0 : i32
    %c0_i32_1 = arith.constant 0 : i32
    return %arg0, %c0_i32, %c0_i32_0 : i32, i32, i32
  }
}

</mosaic_0001>

<bundles_post_ra>
// kernel: spatial_attention_forward.1
= control target key start
LH: loop header
LB: loop body
LE: loop exit
PB: predicated region body
PF: predicated region fallthrough
CT: control target
= control target key end

     0   :  { %s2248_s14 = smov 0   ;;  %s2627_s0 = inlined_call_operand.vmem [shape: f32[2,16,8,128], index: 0, kind: input, shape index: {}]   ;;  %s2628_s1 = inlined_call_operand.vmem [shape: bf16[7,256,128], index: 1, kind: input, shape index: {}]   ;;  %s2629_s2 = inlined_call_operand.<no memory space> [shape: f32[1], index: 2, kind: input, shape index: {}]   ;;  %s2630_s3 = inlined_call_operand.vmem [shape: f32[2,8,128], index: 3, kind: output, shape index: {}]  }
   0x1   :  { %8 = sst [smem:[#allocation3]] %s2629_s2 }
   0x2 LB: > { %s1606_s15 = sadd.s32 4294967295, %s2222_s14   ;;  %p1610_p0 = scmp.ge.s32.totalorder %s2222_s14, 1  ;;  %s2222_s14 = sphi %s2248_s14, %s14_s14  }
   0x3   : > { %p138_p1 = scmp.lt.s32.totalorder %s2222_s14, 3 }
   0x5   : > { %p139_p2 = pnand %p1610_p0, %p138_p1 }
   0x6   : > { %v2100_v0 = vld [vmem:[%s2628_s1 + $0xc0] sm:$0xff] (!%p139_p2)   ;;  %v2224_v3 = vmov (!%p139_p2), 0.0   ;;  %v2104_v5 = vld [vmem:[%s2628_s1 + $0xc8] sm:$0xff] (!%p139_p2)   ;;  %v2108_v9 = vld [vmem:[%s2628_s1 + $0xd0] sm:$0xff] (!%p139_p2)   ;;  %p161_p3 = scmp.lt.s32.totalorder (!%p139_p2), %s1606_s15, 1  ;;  %s1543_s8 = sld [smem:[#allocation3]] (!%p139_p2) }
   0x7   : > { %142 = sbr.rel (%p139_p2) target bundleno = 410 (0x19a), region = 32  ;;  %v2101_v1 = vld [vmem:[%s2628_s1 + $0x80] sm:$0xff] (!%p139_p2)   ;;  %1937 = vmatprep.subr.bf16.mxu0 (!%p139_p2), %v2100_v0  ;;  %233 = vst [vmem:[#allocation2 + $0x8] sm:$0xff] (!%p139_p2), %v2224_v3  ;;  %235 = vst [vmem:[#allocation2 + $0x18] sm:$0x3f] (!%p139_p2), %v2224_v3  ;;  %v2105_v6 = vld [vmem:[%s2628_s1 + $0x88] sm:$0xff] (!%p139_p2)  }
   0x8   : > { %v2102_v2 = vld [vmem:[%s2628_s1 + $0x40] sm:$0xff] (!%p139_p2)   ;;  %232 = vst [vmem:[#allocation2] sm:$0xff] (!%p139_p2), %v2224_v3  ;;  %234 = vst [vmem:[#allocation2 + $0x10] sm:$0x3f] (!%p139_p2), %v2224_v3  ;;  %1938 = vmatpush3.bf16.msra.mxu0 (!%p139_p2), %v2101_v1  ;;  %v2106_v7 = vld [vmem:[%s2628_s1 + $0x48] sm:$0xff] (!%p139_p2)  }
   0x9   : > { %v2103_v4 = vld [vmem:[%s2628_s1] sm:$0xff] (!%p139_p2)   ;;  %1959 = vmatprep.subr.bf16.mxu1 (!%p139_p2), %v2102_v2  ;;  %1939 = vmatprep.subr.bf16.mxu0 (!%p139_p2), %v2104_v5  ;;  %v2107_v8 = vld [vmem:[%s2628_s1 + $0x8] sm:$0xff] (!%p139_p2)   ;;  %v2109_v10 = vld [vmem:[%s2628_s1 + $0x90] sm:$0xff] (!%p139_p2)  }
   0xa   : > { %1960 = vmatpush3.bf16.msra.mxu1 (!%p139_p2), %v2103_v4  ;;  %v2110_v11 = vld [vmem:[%s2628_s1 + $0x50] sm:$0xff] (!%p139_p2)   ;;  %v2112_v13 = vld [vmem:[%s2628_s1 + $0xd8] sm:$0xff] (!%p139_p2)   ;;  %v2116_v17 = vld [vmem:[%s2628_s1 + $0xe0] sm:$0xff] (!%p139_p2)  }
   0xb   : > { %1961 = vmatprep.subr.bf16.mxu1 (!%p139_p2), %v2106_v7  ;;  %v2111_v12 = vld [vmem:[%s2628_s1 + $0x10] sm:$0xff] (!%p139_p2)   ;;  %v2113_v14 = vld [vmem:[%s2628_s1 + $0x98] sm:$0xff] (!%p139_p2)   ;;  %v2117_v18 = vld [vmem:[%s2628_s1 + $0xa0] sm:$0xff] (!%p139_p2)  }
   0xc   : > { %1940 = vmatpush3.bf16.msra.mxu0 (!%p139_p2), %v2105_v6  ;;  %v2114_v15 = vld [vmem:[%s2628_s1 + $0x58] sm:$0xff] (!%p139_p2)   ;;  %v2118_v19 = vld [vmem:[%s2628_s1 + $0x60] sm:$0xff] (!%p139_p2)   ;;  %v2120_v21 = vld [vmem:[%s2628_s1 + $0xe8] sm:$0xff] (!%p139_p2)  }
   0xd   : > { %1941 = vmatprep.subr.bf16.mxu0 (!%p139_p2), %v2108_v9  ;;  %v2115_v16 = vld [vmem:[%s2628_s1 + $0x18] sm:$0xff] (!%p139_p2)   ;;  %v2119_v20 = vld [vmem:[%s2628_s1 + $0x20] sm:$0xff] (!%p139_p2)   ;;  %v2121_v22 = vld [vmem:[%s2628_s1 + $0xa8] sm:$0xff] (!%p139_p2)  }
   0xe   : > { %1962 = vmatpush3.bf16.msra.mxu1 %v2107_v8  ;;  %v2122_v23 = vld [vmem:[%s2628_s1 + $0x68] sm:$0xff]   ;;  %s2632_s15 = smov (!%p161_p3, %s1606_s15), 1  ;;  %v2124_v25 = vld [vmem:[%s2628_s1 + $0xf0] sm:$0xff]   ;;  %v2128_v29 = vld [vmem:[%s2628_s1 + $0xf8] sm:$0xff]  }
   0xf   : > { %1963 = vmatprep.subr.bf16.mxu1 %v2110_v11  ;;  %v2123_v24 = vld [vmem:[%s2628_s1 + $0x28] sm:$0xff]   ;;  %v2125_v26 = vld [vmem:[%s2628_s1 + $0xb0] sm:$0xff]   ;;  %s1936_s2 = sshll.u32 %s2632_s15, 7  ;;  %v2129_v30 = vld [vmem:[%s2628_s1 + $0xb8] sm:$0xff]   ;;  %s1613_s9 = sshll.u32 %s2632_s15, 3 }
  0x10   : > { %1942 = vmatpush3.bf16.msra.mxu0 %v2109_v10  ;;  %v2126_v27 = vld [vmem:[%s2628_s1 + $0x70] sm:$0xff]   ;;  %s2356_s26 = scalar_lea.vmem %s2627_s0, %s1936_s2  ;;  %v2130_v31 = vld [vmem:[%s2628_s1 + $0x78] sm:$0xff]   ;;  %v2132_v45 = vld [vmem:[%s2628_s1 + $0x140] sm:$0xff]   ;;  %s169_s12 = scalar_lea.vmem %s2630_s3, %s1613_s9 }
  0x11   : > { %1943 = vmatprep.subr.bf16.mxu0 %v2112_v13  ;;  %v2127_v28 = vld [vmem:[%s2628_s1 + $0x30] sm:$0xff]   ;;  %v2131_v32 = vld [vmem:[%s2628_s1 + $0x38] sm:$0xff]   ;;  %v171_v33 = vld [vmem:[%s2356_s26] sm:$0xff] }
  0x12   : > { %1964 = vmatpush3.bf16.msra.mxu1 %v2111_v12  ;;  %v1614_v34 = vld [vmem:[%s2356_s26 + $0x8] sm:$0xff]  ;;  %v1615_v35 = vld [vmem:[%s2356_s26 + $0x10] sm:$0xff]  ;;  %v1616_v38 = vld [vmem:[%s2356_s26 + $0x18] sm:$0xff] }
  0x13   : > { %1965 = vmatprep.subr.bf16.mxu1 %v2114_v15  ;;  %v174_v36 = vmax.f32 %v171_v33, %v1614_v34  ;;  %v175_v37 = vadd.f32 %v1614_v34, %v171_v33  ;;  %v1617_v41 = vld [vmem:[%s2356_s26 + $0x20] sm:$0xff]  ;;  %v1618_v44 = vld [vmem:[%s2356_s26 + $0x28] sm:$0xff]  ;;  %v1619_v48 = vld [vmem:[%s2356_s26 + $0x30] sm:$0xff] }
  0x14   : > { %1944 = vmatpush3.bf16.msra.mxu0 %v2113_v14  ;;  %v2134_v49 = vld [vmem:[%s2628_s1 + $0x1c0] sm:$0xff]   ;;  %v1620_v52 = vld [vmem:[%s2356_s26 + $0x38] sm:$0xff]  ;;  %v1622_v58 = vld [vmem:[%s2356_s26 + $0x48] sm:$0xff] }
  0x15   : > { %1945 = vmatprep.subr.bf16.mxu0 %v2116_v17  ;;  %v178_v39 = vmax.f32 %v174_v36, %v1615_v35  ;;  %v179_v40 = vadd.f32 %v1615_v35, %v175_v37  ;;  %v1621_v55 = vld [vmem:[%s2356_s26 + $0x40] sm:$0xff]  ;;  %v1623_v61 = vld [vmem:[%s2356_s26 + $0x50] sm:$0xff]  ;;  %v1624_v0 = vld [vmem:[%s2356_s26 + $0x58] sm:$0xff] }
  0x16   : > { %1966 = vmatpush3.bf16.msra.mxu1 %v2115_v16  ;;  %v1625_v3 = vld [vmem:[%s2356_s26 + $0x60] sm:$0xff]  ;;  %v1626_v6 = vld [vmem:[%s2356_s26 + $0x68] sm:$0xff]  ;;  %v1627_v9 = vld [vmem:[%s2356_s26 + $0x70] sm:$0xff] }
  0x17   : > { %1967 = vmatprep.subr.bf16.mxu1 %v2118_v19  ;;  %v182_v42 = vmax.f32 %v178_v39, %v1616_v38  ;;  %v183_v43 = vadd.f32 %v1616_v38, %v179_v40  ;;  %v1628_v12 = vld [vmem:[%s2356_s26 + $0x78] sm:$0xff]  ;;  %v2135_v19 = vld [vmem:[%s2628_s1 + $0x180] sm:$0xff]  }
  0x18   : > { %1946 = vmatpush3.bf16.msra.mxu0 %v2117_v18 }
  0x19   : > { %1947 = vmatprep.subr.bf16.mxu0 %v2120_v21  ;;  %v186_v46 = vmax.f32 %v182_v42, %v1617_v41  ;;  %v187_v47 = vadd.f32 %v1617_v41, %v183_v43  ;;  %v2133_v41 = vld [vmem:[%s2628_s1 + $0x100] sm:$0xff]   ;;  %v2139_v42 = vld [vmem:[%s2628_s1 + $0x188] sm:$0xff]   ;;  %v2142_v43 = vld [vmem:[%s2628_s1 + $0x1d0] sm:$0xff]  }
  0x1a   : > { %1968 = vmatpush3.bf16.msra.mxu1 %v2119_v20 }
  0x1b   : > { %1969 = vmatprep.subr.bf16.mxu1 %v2122_v23  ;;  %v190_v50 = vmax.f32 %v186_v46, %v1618_v44  ;;  %v191_v51 = vadd.f32 %v1618_v44, %v187_v47 }
  0x1c   : > { %1948 = vmatpush3.bf16.msra.mxu0 %v2121_v22 }
  0x1d   : > { %1949 = vmatprep.subr.bf16.mxu0 %v2124_v25  ;;  %v194_v53 = vmax.f32 %v190_v50, %v1619_v48  ;;  %v195_v54 = vadd.f32 %v1619_v48, %v191_v51  ;;  %v2136_v51 = vld [vmem:[%s2628_s1 + $0x148] sm:$0xff]  }
  0x1e   : > { %1970 = vmatpush3.bf16.msra.mxu1 %v2123_v24 }
  0x1f   : > { %1971 = vmatprep.subr.bf16.mxu1 %v2126_v27  ;;  %v198_v56 = vmax.f32 %v194_v53, %v1620_v52  ;;  %v199_v57 = vadd.f32 %v1620_v52, %v195_v54  ;;  %v2143_v52 = vld [vmem:[%s2628_s1 + $0x190] sm:$0xff]  }
  0x20   : > { %1950 = vmatpush3.bf16.msra.mxu0 %v2125_v26 }
  0x21   : > { %1951 = vmatprep.subr.bf16.mxu0 %v2128_v29  ;;  %v202_v59 = vmax.f32 %v198_v56, %v1621_v55  ;;  %v203_v60 = vadd.f32 %v1621_v55, %v199_v57  ;;  %v2137_v55 = vld [vmem:[%s2628_s1 + $0x108] sm:$0xff]   ;;  %v2146_v56 = vld [vmem:[%s2628_s1 + $0x1d8] sm:$0xff]  }
  0x22   : > { %1972 = vmatpush3.bf16.msra.mxu1 %v2127_v28 }
  0x23   : > { %1973 = vmatprep.subr.bf16.mxu1 %v2130_v31  ;;  %v206_v62 = vmax.f32 %v202_v59, %v1622_v58  ;;  %v207_v63 = vadd.f32 %v1622_v58, %v203_v60  ;;  %v2140_v58 = vld [vmem:[%s2628_s1 + $0x150] sm:$0xff]   ;;  %v2147_v60 = vld [vmem:[%s2628_s1 + $0x198] sm:$0xff]  }
  0x24   : > { %1952 = vmatpush3.bf16.msra.mxu0 %v2129_v30  ;;  %v2138_v30 = vld [vmem:[%s2628_s1 + $0x1c8] sm:$0xff]   ;;  %v2141_v59 = vld [vmem:[%s2628_s1 + $0x110] sm:$0xff]  }
  0x25   : > { %1981 = vmatprep.subr.bf16.mxu0 %v2132_v45  ;;  %v210_v1 = vmax.f32 %v206_v62, %v1623_v61  ;;  %v211_v2 = vadd.f32 %v1623_v61, %v207_v63  ;;  %v2144_v61 = vld [vmem:[%s2628_s1 + $0x158] sm:$0xff]   ;;  %v2150_v62 = vld [vmem:[%s2628_s1 + $0x1e0] sm:$0xff]  }
  0x26   : > { %1974 = vmatpush3.bf16.msra.mxu1 %v2131_v32  ;;  %v2151_v63 = vld [vmem:[%s2628_s1 + $0x1a0] sm:$0xff]  }
  0x27   : > { %2003 = vmatprep.subr.bf16.mxu1 %v2134_v49  ;;  %v214_v4 = vmax.f32 %v210_v1, %v1624_v0  ;;  %v215_v5 = vadd.f32 %v1624_v0, %v211_v2  ;;  %v2154_v2 = vld [vmem:[%s2628_s1 + $0x1e8] sm:$0xff]  }
  0x29   : > { %v218_v7 = vmax.f32 %v214_v4, %v1625_v3  ;;  %v219_v8 = vadd.f32 %v1625_v3, %v215_v5  ;;  %v2145_v3 = vld [vmem:[%s2628_s1 + $0x118] sm:$0xff]   ;;  %v2148_v4 = vld [vmem:[%s2628_s1 + $0x160] sm:$0xff]  }
  0x2b   : > { %v222_v10 = vmax.f32 %v218_v7, %v1626_v6  ;;  %v223_v11 = vadd.f32 %v1626_v6, %v219_v8  ;;  %v2149_v6 = vld [vmem:[%s2628_s1 + $0x120] sm:$0xff]   ;;  %v2155_v7 = vld [vmem:[%s2628_s1 + $0x1a8] sm:$0xff]   ;;  %v2158_v8 = vld [vmem:[%s2628_s1 + $0x1f0] sm:$0xff]  }
  0x2d   : > { %v226_v13 = vmax.f32 %v222_v10, %v1627_v9  ;;  %v227_v14 = vadd.f32 %v1627_v9, %v223_v11  ;;  %v2152_v9 = vld [vmem:[%s2628_s1 + $0x168] sm:$0xff]  }
  0x2f   : > { %v230_v15 = vmax.f32 %v226_v13, %v1628_v12  ;;  %v231_v16 = vadd.f32 %v1628_v12, %v227_v14  ;;  %v2153_v12 = vld [vmem:[%s2628_s1 + $0x128] sm:$0xff]   ;;  %v2159_v13 = vld [vmem:[%s2628_s1 + $0x1b0] sm:$0xff]  }
  0x30   : > { %v2156_v14 = vld [vmem:[%s2628_s1 + $0x170] sm:$0xff]  }
  0x31   : > { %v237_v17 = vrot.slane %v230_v15, 5  ;;  %v242_v18 = vrot.slane %v231_v16, 5  ;;  %v2162_v15 = vld [vmem:[%s2628_s1 + $0x1f8] sm:$0xff]  }
  0x32   : > { %v2163_v16 = vld [vmem:[%s2628_s1 + $0x1b8] sm:$0xff]  }
  0x33   : > { %244 = vst [vmem:[#allocation2 + $0x8] sm:$0xf8] %v242_v18  ;;  %245 = vst [vmem:[#allocation2 + $0x18] sm:$0x7] %v242_v18 }
  0x34   : > { %239 = vst [vmem:[#allocation2] sm:$0xf8] %v237_v17  ;;  %240 = vst [vmem:[#allocation2 + $0x10] sm:$0x7] %v237_v17 }
  0x3a   : > { %v283_v20 = vld [vmem:[#allocation2 + $0x8] sm:$0xfe]  ;;  %v285_v21 = vld [vmem:[#allocation2 + $0x18] sm:$0x1] }
  0x3b   : > { %v247_v22 = vld [vmem:[#allocation2 + $0x8] sm:$0xff]  ;;  %v287_v23 = vpack.c.bf16 %v285_v21, %v283_v20  ;;  %v282_v25 = vld [vmem:[#allocation2] sm:$0xfe]  ;;  %v284_v26 = vld [vmem:[#allocation2 + $0x10] sm:$0x1] }
  0x3c   : > { %v249_v24 = vpack.c.bf16 %v247_v22, %v247_v22  ;;  %v246_v27 = vld [vmem:[#allocation2] sm:$0xff]  ;;  %v286_v28 = vpack.c.bf16 %v284_v26, %v282_v25  ;;  %v610_v31 = vld [vmem:[#allocation2 + $0x8] sm:$0xfc]  ;;  %v612_v32 = vld [vmem:[#allocation2 + $0x18] sm:$0x3] }
  0x3d   : > { %v248_v29 = vpack.c.bf16 %v246_v27, %v246_v27  ;;  %v329_v33 = vshrl.u32 %v287_v23, 16  ;;  %v331_v34 = vshll.u32 %v287_v23, 16  ;;  %v614_v35 = vpack.c.bf16 %v612_v32, %v610_v31  ;;  %v792_v36 = vld [vmem:[#allocation2 + $0x8] sm:$0xf8]  ;;  %v794_v39 = vld [vmem:[#allocation2 + $0x18] sm:$0x7] }
  0x3e   : > { %601 = vmatprep.mubr.bf16.mxu1 %v249_v24  ;;  %v322_v37 = vshrl.u32 %v286_v28, 16  ;;  %v324_v38 = vshll.u32 %v286_v28, 16  ;;  %v796_v44 = vpack.c.bf16 %v794_v39, %v792_v36  ;;  %v791_v0 = vld [vmem:[#allocation2] sm:$0xf8]  ;;  %v793_v1 = vld [vmem:[#allocation2 + $0x10] sm:$0x7] }
  0x3f   : > { %602 = vmatmul.mubr.bf16.vlgmr.msra.gmra.mrb[0].mxu1 %v248_v29  ;;  %v333_v40 = vrot.slane %v331_v34, 1  ;;  %v651_v46 = vrot.slane %v614_v35, 1  ;;  %v795_v5 = vpack.c.bf16 %v793_v1, %v791_v0  ;;  %v609_v20 = vld [vmem:[#allocation2] sm:$0xfc]  ;;  %v611_v22 = vld [vmem:[#allocation2 + $0x10] sm:$0x3] }
  0x40   : > { %2004 = vmatpush3.bf16.msra.mxu1 %v2135_v19  ;;  %v326_v45 = vrot.slane %v324_v38, 1  ;;  %v839_v48 = vshrl.u32 %v796_v44, 16  ;;  %v842_v49 = vshll.u32 %v796_v44, 16  ;;  %v2157_v19 = vld [vmem:[%s2628_s1 + $0x130] sm:$0xff]   ;;  %v2166_v21 = vld [vmem:[%s2628_s1 + $0x2c0] sm:$0xff]   ;;  %v2160_v23 = vld [vmem:[%s2628_s1 + $0x178] sm:$0xff]   ;;  %v613_v27 = vpack.c.bf16 %v611_v22, %v609_v20 }
  0x41   : > { %2005 = vmatprep.subr.bf16.mxu1 %v2138_v30  ;;  %v334_v47 = vor.u32 %v333_v40, %v329_v33  ;;  %v831_v10 = vshrl.u32 %v795_v5, 16  ;;  %v834_v11 = vshll.u32 %v795_v5, 16  ;;  %v2161_v25 = vld [vmem:[%s2628_s1 + $0x138] sm:$0xff]   ;;  %v2167_v26 = vld [vmem:[%s2628_s1 + $0x280] sm:$0xff]   ;;  %v2170_v28 = vld [vmem:[%s2628_s1 + $0x2c8] sm:$0xff]  }
  0x42   : > { %v327_v50 = vor.u32 %v326_v45, %v322_v37  ;;  %v841_v53 = vrot.slane %v839_v48, 1  ;;  %v844_v54 = vrot.slane %v842_v49, 2  ;;  %v986_v29 = vld [vmem:[#allocation2 + $0x8] sm:$0xf0]  ;;  %v988_v30 = vld [vmem:[#allocation2 + $0x18] sm:$0xf] }
  0x43   : > { %465 = vmatprep.mubr.bf16.mxu0 %v334_v47  ;;  %v833_v17 = vrot.slane %v831_v10, 1  ;;  %v836_v18 = vrot.slane %v834_v11, 2  ;;  %v2164_v31 = vld [vmem:[%s2628_s1 + $0x240] sm:$0xff]   ;;  %v990_v32 = vpack.c.bf16 %v988_v30, %v986_v29  ;;  %v2171_v33 = vld [vmem:[%s2628_s1 + $0x288] sm:$0xff]   ;;  %v650_v34 = vrot.slane %v613_v27, 1  ;;  %v2174_v35 = vld [vmem:[%s2628_s1 + $0x2d0] sm:$0xff]  }
  0x44   : > { %2006 = vmatpush3.bf16.msra.mxu1 %v2139_v42  ;;  %466 = vmatmul.mubr.bf16.vlgmr.msra.gmra.mrb[0].mxu0 %v327_v50  ;;  %v845_v57 = vor.u32 %v844_v54, %v841_v53  ;;  %v1168_v36 = vld [vmem:[#allocation2 + $0x8] sm:$0xe0]  ;;  %v1170_v37 = vld [vmem:[#allocation2 + $0x18] sm:$0x1f]  ;;  %v2165_v38 = vld [vmem:[%s2628_s1 + $0x200] sm:$0xff]  }
  0x45   : > { %2007 = vmatprep.subr.bf16.mxu1 %v2142_v43  ;;  %1982 = vmatpush3.bf16.msra.mxu0 %v2133_v41  ;;  %v837_v24 = vor.u32 %v836_v18, %v833_v17  ;;  %v1027_v39 = vrot.slane %v990_v32, 2  ;;  %v1172_v40 = vpack.c.bf16 %v1170_v37, %v1168_v36  ;;  %v2168_v41 = vld [vmem:[%s2628_s1 + $0x248] sm:$0xff]   ;;  %v2175_v42 = vld [vmem:[%s2628_s1 + $0x290] sm:$0xff]   ;;  %v2178_v45 = vld [vmem:[%s2628_s1 + $0x2d8] sm:$0xff]  }
  0x46   : > { %782 = vmatprep.mubr.bf16.mxu0 %v651_v46  ;;  %1983 = vmatprep.subr.bf16.mxu0 %v2136_v51  ;;  %v2169_v46 = vld [vmem:[%s2628_s1 + $0x208] sm:$0xff]   ;;  %v2172_v49 = vld [vmem:[%s2628_s1 + $0x250] sm:$0xff]   ;;  %v2179_v51 = vld [vmem:[%s2628_s1 + $0x298] sm:$0xff]  }
  0x47   : > { %976 = vmatprep.mubr.bf16.mxu1 %v845_v57  ;;  %v1215_v43 = vshrl.u32 %v1172_v40, 16  ;;  %v1218_v44 = vshll.u32 %v1172_v40, 16  ;;  %v2173_v50 = vld [vmem:[%s2628_s1 + $0x210] sm:$0xff]   ;;  %v2176_v54 = vld [vmem:[%s2628_s1 + $0x258] sm:$0xff]   ;;  %v2181_v0 = vld [vmem:[%s2628_s1 + $0x220] sm:$0xff]  }
  0x48   : > { %2008 = vmatpush3.bf16.msra.mxu1 %v2143_v52  ;;  %v2182_v52 = vld [vmem:[%s2628_s1 + $0x2e0] sm:$0xff]   ;;  %v1169_v57 = vld [vmem:[#allocation2 + $0x10] sm:$0x1f]  ;;  %v2184_v1 = vld [vmem:[%s2628_s1 + $0x268] sm:$0xff]  }
  0x49   : > { %2009 = vmatprep.subr.bf16.mxu1 %v2146_v56  ;;  %1984 = vmatpush3.bf16.msra.mxu0 %v2137_v55  ;;  %v1217_v47 = vrot.slane %v1215_v43, 2  ;;  %v1220_v48 = vrot.slane %v1218_v44, 3  ;;  %v2183_v55 = vld [vmem:[%s2628_s1 + $0x2a0] sm:$0xff]   ;;  %v2194_v5 = vld [vmem:[%s2628_s1 + $0x2f8] sm:$0xff]   ;;  %v2189_v11 = vld [vmem:[%s2628_s1 + $0x230] sm:$0xff]  }
  0x4a   : > { %1985 = vmatprep.subr.bf16.mxu0 %v2140_v58  ;;  %v1167_v56 = vld [vmem:[#allocation2] sm:$0xe0]  ;;  %v2186_v58 = vld [vmem:[%s2628_s1 + $0x2e8] sm:$0xff]   ;;  %v2195_v10 = vld [vmem:[%s2628_s1 + $0x2b8] sm:$0xff]  }
  0x4b   : > { %v1221_v53 = vor.u32 %v1220_v48, %v1217_v47  ;;  %v1364_v17 = vld [vmem:[#allocation2 + $0x18] sm:$0x3f]  ;;  %v2200_v27 = vld [vmem:[%s2628_s1 + $0x350] sm:$0xff]   ;;  %v2205_v32 = vld [vmem:[%s2628_s1 + $0x320] sm:$0xff]  }
  0x4c   : > { %2010 = vmatpush3.bf16.msra.mxu1 %v2147_v60  ;;  %v2180_v60 = vld [vmem:[%s2628_s1 + $0x260] sm:$0xff]   ;;  %v2202_v29 = vld [vmem:[%s2628_s1 + $0x358] sm:$0xff]   ;;  %v2209_v36 = vld [vmem:[%s2628_s1 + $0x330] sm:$0xff]  }
  0x4d   : > { %2011 = vmatprep.subr.bf16.mxu1 %v2150_v62  ;;  %1986 = vmatpush3.bf16.msra.mxu0 %v2141_v59  ;;  %v2177_v59 = vld [vmem:[%s2628_s1 + $0x218] sm:$0xff]   ;;  %v2187_v62 = vld [vmem:[%s2628_s1 + $0x2a8] sm:$0xff]   ;;  %v1361_v37 = vld [vmem:[#allocation2] sm:$0xc0] }
  0x4e   : > { %1987 = vmatprep.subr.bf16.mxu0 %v2144_v61  ;;  %v1171_v61 = vpack.c.bf16 %v1169_v57, %v1167_v56  ;;  %v2203_v30 = vld [vmem:[%s2628_s1 + $0x318] sm:$0xff]  }
  0x50   : > { %2012 = vmatpush3.bf16.msra.mxu1 %v2151_v63  ;;  %v2190_v63 = vld [vmem:[%s2628_s1 + $0x2f0] sm:$0xff]  }
  0x51   : > { %2013 = vmatprep.subr.bf16.mxu1 %v2154_v2  ;;  %1988 = vmatpush3.bf16.msra.mxu0 %v2145_v3  ;;  %v1207_v2 = vshrl.u32 %v1171_v61, 16  ;;  %v1210_v3 = vshll.u32 %v1171_v61, 16 }
  0x52   : > { %1989 = vmatprep.subr.bf16.mxu0 %v2148_v4  ;;  %v2191_v4 = vld [vmem:[%s2628_s1 + $0x2b0] sm:$0xff]  }
  0x54   : > { %2014 = vmatpush3.bf16.msra.mxu1 %v2155_v7  ;;  %v2188_v7 = vld [vmem:[%s2628_s1 + $0x270] sm:$0xff]  }
  0x55   : > { %2015 = vmatprep.subr.bf16.mxu1 %v2158_v8  ;;  %1990 = vmatpush3.bf16.msra.mxu0 %v2149_v6  ;;  %v2185_v6 = vld [vmem:[%s2628_s1 + $0x228] sm:$0xff]   ;;  %v1209_v8 = vrot.slane %v1207_v2, 2 }
  0x56   : > { %1991 = vmatprep.subr.bf16.mxu0 %v2152_v9  ;;  %v1212_v9 = vrot.slane %v1210_v3, 3 }
  0x58   : > { %2016 = vmatpush3.bf16.msra.mxu1 %v2159_v13  ;;  %v987_v13 = vld [vmem:[#allocation2 + $0x10] sm:$0xf] }
  0x59   : > { %2017 = vmatprep.subr.bf16.mxu1 %v2162_v15  ;;  %1992 = vmatpush3.bf16.msra.mxu0 %v2153_v12  ;;  %v985_v12 = vld [vmem:[#allocation2] sm:$0xf0]  ;;  %v1213_v15 = vor.u32 %v1212_v9, %v1209_v8 }
  0x5a   : > { %1993 = vmatprep.subr.bf16.mxu0 %v2156_v14  ;;  %v2192_v14 = vld [vmem:[%s2628_s1 + $0x278] sm:$0xff]   ;;  %v989_v18 = vpack.c.bf16 %v987_v13, %v985_v12 }
  0x5c   : > { %2018 = vmatpush3.bf16.msra.mxu1 %v2163_v16  ;;  %v1362_v16 = vld [vmem:[#allocation2 + $0x8] sm:$0xc0]  ;;  %v1026_v22 = vrot.slane %v989_v18, 2  ;;  %v1544_v18 = vstv %s1543_s8 }
  0x5d   : > { %2047 = vmatprep.subr.bf16.mxu1 %v2166_v21  ;;  %1994 = vmatpush3.bf16.msra.mxu0 %v2157_v19  ;;  %v2193_v19 = vld [vmem:[%s2628_s1 + $0x238] sm:$0xff]   ;;  %v1366_v20 = vpack.c.bf16 %v1364_v17, %v1362_v16  ;;  %v2196_v21 = vld [vmem:[%s2628_s1 + $0x340] sm:$0xff]  }
  0x5e   : > { %1995 = vmatprep.subr.bf16.mxu0 %v2160_v23  ;;  %v2197_v23 = vld [vmem:[%s2628_s1 + $0x300] sm:$0xff]  }
  0x5f   : > { %977 = vmatmul.mubr.bf16.vlgmr.msra.gmra.mrb[4].mxu1 %v837_v24  ;;  %v1403_v24 = vrot.slane %v1366_v20, 3 }
  0x60   : > { %2048 = vmatpush3.bf16.msra.mxu1 %v2167_v26  ;;  %1352 = vmatprep.mubr.bf16.mxu1 %v1221_v53  ;;  %v2199_v26 = vld [vmem:[%s2628_s1 + $0x308] sm:$0xff]  }
  0x61   : > { %2049 = vmatprep.subr.bf16.mxu1 %v2170_v28  ;;  %1996 = vmatpush3.bf16.msra.mxu0 %v2161_v25  ;;  %v2198_v25 = vld [vmem:[%s2628_s1 + $0x348] sm:$0xff]   ;;  %v2201_v28 = vld [vmem:[%s2628_s1 + $0x310] sm:$0xff]  }
  0x62   : > { %2025 = vmatprep.subr.bf16.mxu0 %v2164_v31  ;;  %v2204_v31 = vld [vmem:[%s2628_s1 + $0x360] sm:$0xff]  }
  0x64   : > { %2050 = vmatpush3.bf16.msra.mxu1 %v2171_v33  ;;  %783 = vmatmul.mubr.bf16.vlgmr.msra.gmra.mrb[4].mxu0 %v650_v34  ;;  %v2206_v33 = vld [vmem:[%s2628_s1 + $0x368] sm:$0xff]  }
  0x65   : > { %2051 = vmatprep.subr.bf16.mxu1 %v2174_v35  ;;  %2026 = vmatpush3.bf16.msra.mxu0 %v2165_v38  ;;  %v2207_v34 = vld [vmem:[%s2628_s1 + $0x328] sm:$0xff]   ;;  %v2208_v35 = vld [vmem:[%s2628_s1 + $0x370] sm:$0xff]  }
  0x66   : > { %1158 = vmatprep.mubr.bf16.mxu0 %v1027_v39  ;;  %2027 = vmatprep.subr.bf16.mxu0 %v2168_v41  ;;  %v1363_v38 = vld [vmem:[#allocation2 + $0x10] sm:$0x3f]  ;;  %v2210_v39 = vld [vmem:[%s2628_s1 + $0x378] sm:$0xff]  }
  0x67   : > { %v1365_v40 = vpack.c.bf16 %v1363_v38, %v1361_v37  ;;  %v2211_v41 = vld [vmem:[%s2628_s1 + $0x338] sm:$0xff]  }
  0x68   : > { %2052 = vmatpush3.bf16.msra.mxu1 %v2175_v42 }
  0x69   : > { %2053 = vmatprep.subr.bf16.mxu1 %v2178_v45  ;;  %2028 = vmatpush3.bf16.msra.mxu0 %v2169_v46  ;;  %v1402_v42 = vrot.slane %v1365_v40, 3 }
  0x6a   : > { %2029 = vmatprep.subr.bf16.mxu0 %v2172_v49 }
  0x6c   : > { %2054 = vmatpush3.bf16.msra.mxu1 %v2179_v51 }
  0x6d   : > { %2055 = vmatprep.subr.bf16.mxu1 %v2182_v52  ;;  %2030 = vmatpush3.bf16.msra.mxu0 %v2173_v50 }
  0x6e   : > { %2031 = vmatprep.subr.bf16.mxu0 %v2176_v54 }
  0x70   : > { %2056 = vmatpush3.bf16.msra.mxu1 %v2183_v55 }
  0x71   : > { %2057 = vmatprep.subr.bf16.mxu1 %v2186_v58  ;;  %2032 = vmatpush3.bf16.msra.mxu0 %v2177_v59 }
  0x72   : > { %2033 = vmatprep.subr.bf16.mxu0 %v2180_v60 }
  0x74   : > { %2058 = vmatpush3.bf16.msra.mxu1 %v2187_v62 }
  0x75   : > { %2059 = vmatprep.subr.bf16.mxu1 %v2190_v63  ;;  %2034 = vmatpush3.bf16.msra.mxu0 %v2181_v0 }
  0x76   : > { %2035 = vmatprep.subr.bf16.mxu0 %v2184_v1 }
  0x78   : > { %2060 = vmatpush3.bf16.msra.mxu1 %v2191_v4 }
  0x79   : > { %2061 = vmatprep.subr.bf16.mxu1 %v2194_v5  ;;  %2036 = vmatpush3.bf16.msra.mxu0 %v2185_v6 }
  0x7a   : > { %2037 = vmatprep.subr.bf16.mxu0 %v2188_v7 }
  0x7c   : > { %2062 = vmatpush3.bf16.msra.mxu1 %v2195_v10 }
  0x7d   : > { %2038 = vmatpush3.bf16.msra.mxu0 %v2189_v11 }
  0x7e   : > { %2039 = vmatprep.subr.bf16.mxu0 %v2192_v14 }
  0x7f   : > { %1353 = vmatmul.mubr.bf16.vlgmr.msra.gmra.mrb[8].mxu1 %v1213_v15 }
  0x81   : > { %2040 = vmatpush3.bf16.msra.mxu0 %v2193_v19 }
  0x82   : > { %2069 = vmatprep.subr.bf16.mxu0 %v2196_v21 }
  0x84   : > { %1159 = vmatmul.mubr.bf16.vlgmr.msra.gmra.mrb[8].mxu0 %v1026_v22 }
  0x85   : > { %2070 = vmatpush3.bf16.msra.mxu0 %v2197_v23  ;;  %1534 = vmatprep.mubr.bf16.mxu0 %v1403_v24 }
  0x86   : > { %2071 = vmatprep.subr.bf16.mxu0 %v2198_v25 }
  0x89   : > { %2072 = vmatpush3.bf16.msra.mxu0 %v2199_v26 }
  0x8a   : > { %2073 = vmatprep.subr.bf16.mxu0 %v2200_v27 }
  0x8d   : > { %2074 = vmatpush3.bf16.msra.mxu0 %v2201_v28 }
  0x8e   : > { %2075 = vmatprep.subr.bf16.mxu0 %v2202_v29 }
  0x91   : > { %2076 = vmatpush3.bf16.msra.mxu0 %v2203_v30 }
  0x92   : > { %2077 = vmatprep.subr.bf16.mxu0 %v2204_v31 }
  0x95   : > { %2078 = vmatpush3.bf16.msra.mxu0 %v2205_v32 }
  0x96   : > { %2079 = vmatprep.subr.bf16.mxu0 %v2206_v33 }
  0x99   : > { %2080 = vmatpush3.bf16.msra.mxu0 %v2207_v34 }
  0x9a   : > { %2081 = vmatprep.subr.bf16.mxu0 %v2208_v35 }
  0x9d   : > { %2082 = vmatpush3.bf16.msra.mxu0 %v2209_v36 }
  0x9e   : > { %2083 = vmatprep.subr.bf16.mxu0 %v2210_v39 }
  0xa1   : > { %2084 = vmatpush3.bf16.msra.mxu0 %v2211_v41 }
  0xa4   : > { %1535 = vmatmul.mubr.bf16.vlgmr.msra.gmra.mrb[12].mxu0 %v1402_v42 }
 0x112   : > { %v1975_v43 = vpop.f32.mrb[0].mxu1 }
 0x113   : > { %v1976_v44 = vpop.f32.mrb[1].mxu1 }
 0x114   : > { %v1977_v45 = vadd.f32 %v1976_v44, %v1975_v43  ;;  %v1978_v46 = vpop.f32.mrb[2].mxu1 }
 0x115   : > { %v1979_v47 = vpop.f32.mrb[3].mxu1 }
 0x117   : > { %v1953_v48 = vpop.f32.mrb[0].mxu0 }
 0x118   : > { %v1954_v49 = vpop.f32.mrb[1].mxu0 }
 0x119   : > { %v1955_v50 = vadd.f32 %v1954_v49, %v1953_v48  ;;  %v1956_v51 = vpop.f32.mrb[2].mxu0 }
 0x11a   : > { %v1957_v52 = vpop.f32.mrb[3].mxu0 }
 0x11b   : > { %v604_v53 = vadd.f32 %v1977_v45, %v1955_v50 }
 0x132   : > { %v2019_v54 = vpop.f32.mrb[4].mxu1 }
 0x133   : > { %v2020_v55 = vpop.f32.mrb[5].mxu1 }
 0x134   : > { %v2021_v56 = vadd.f32 %v2020_v55, %v2019_v54  ;;  %v2022_v57 = vpop.f32.mrb[6].mxu1 }
 0x135   : > { %v2023_v58 = vpop.f32.mrb[7].mxu1 }
 0x137   : > { %v1997_v59 = vpop.f32.mrb[4].mxu0 }
 0x138   : > { %v1998_v60 = vpop.f32.mrb[5].mxu0 }
 0x139   : > { %v1999_v61 = vadd.f32 %v1998_v60, %v1997_v59  ;;  %v2000_v62 = vpop.f32.mrb[6].mxu0 }
 0x13a   : > { %v2001_v63 = vpop.f32.mrb[7].mxu0 }
 0x13b   : > { %v790_v0 = vadd.f32 %v1999_v61, %v604_v53 }
 0x13d   : > { %v984_v1 = vadd.f32 %v2021_v56, %v790_v0 }
 0x152   : > { %v2063_v2 = vpop.f32.mrb[8].mxu1 }
 0x153   : > { %v2064_v3 = vpop.f32.mrb[9].mxu1 }
 0x154   : > { %v2065_v4 = vadd.f32 %v2064_v3, %v2063_v2  ;;  %v2066_v5 = vpop.f32.mrb[10].mxu1 }
 0x155   : > { %v2067_v6 = vpop.f32.mrb[11].mxu1 }
 0x157   : > { %v2041_v7 = vpop.f32.mrb[8].mxu0 }
 0x158   : > { %v2042_v8 = vpop.f32.mrb[9].mxu0 }
 0x159   : > { %v2043_v9 = vadd.f32 %v2042_v8, %v2041_v7  ;;  %v2044_v10 = vpop.f32.mrb[10].mxu0 }
 0x15a   : > { %v2045_v11 = vpop.f32.mrb[11].mxu0 }
 0x15b   : > { %v1166_v12 = vadd.f32 %v2043_v9, %v984_v1 }
 0x15d   : > { %v1360_v13 = vadd.f32 %v2065_v4, %v1166_v12 }
 0x177   : > { %v2085_v14 = vpop.f32.mrb[12].mxu0 }
 0x178   : > { %v2086_v15 = vpop.f32.mrb[13].mxu0 }
 0x179   : > { %v2087_v16 = vadd.f32 %v2086_v15, %v2085_v14  ;;  %v2088_v17 = vpop.f32.mrb[14].mxu0 }
 0x17a   : > { %v2089_v19 = vpop.f32.mrb[15].mxu0 }
 0x17b   : > { %v1542_v20 = vadd.f32 %v2087_v16, %v1360_v13 }
 0x17d   : > { %v1545_v21 = vadd.f32 %v1544_v18, %v1542_v20 }
 0x17f   : > { %v1933_v22 = vmul.f32 -1.442695, %v1545_v21 }
 0x181   : > { %2212 = vpow2.f32 %v1933_v22 }
 0x18b   : > { %v2213_v23 = vpop.eup %2212 }
 0x18c   : > { %v1549_v24 = vadd.f32 1.0, %v2213_v23 }
 0x18e   : > { %2214 = vrcp.f32 %v1549_v24 }
 0x198   : > { %v2215_v25 = vpop.eup %2214 }
 0x199   : > { %1552 = vst [vmem:[%s169_s12] sm:$0xff] %v2215_v25 }
 0x19a PF: > { %s14_s14 = sadd.s32 1, %s2222_s14  }
 0x19b   : > { %p11_p4 = scmp.ge.s32.totalorder %s14_s14, 4  }
 0x19d   :  { %13 = sbr.rel (!%p11_p4) target bundleno = 2 (0x2), region = 83 }

</bundles_post_ra>
